<compile_context>
chip_gen: v7x
topology: tpu7x:2x2x1
jax: 0.10.0
libtpu: 0.0.40
codegen_flags: <defaults>
</compile_context>

<pallas_src>
import functools

import jax
import jax.numpy as jnp
from jax.experimental import pallas as pl
from jax.experimental.pallas import tpu as pltpu

K = 4            # Conv2d kernel size
STRIDE = 2
PAD = 1
BN_EPS = 1e-5    # nn.BatchNorm2d default eps
LRELU_SLOPE = 0.2
LANE = 128
_TILE_CANDIDATES = (1024, 512, 256, 128, 64, 32, 16, 8)


# ----------------------------- kernels --------------------------------------


def _fused_conv_bn_lrelu_kernel(p_ref, w_ref, g_ref, beta_ref, out_ref,
                                *, m_valid: float):
    """Whole M in one tile: conv matmul + batch-stats + BN + LeakyReLU fused."""
    acc = jnp.dot(p_ref[...], w_ref[...], preferred_element_type=jnp.float32)
    inv_m = 1.0 / m_valid
    mean = jnp.sum(acc, axis=0, keepdims=True) * inv_m
    var = jnp.sum(acc * acc, axis=0, keepdims=True) * inv_m - mean * mean
    var = jnp.maximum(var, 0.0)                       # guard fp rounding
    inv = jax.lax.rsqrt(var + BN_EPS)
    y = (acc - mean) * (inv * g_ref[...]) + beta_ref[...]
    out_ref[...] = jnp.maximum(y, LRELU_SLOPE * y).astype(out_ref.dtype)


def _conv_stats_kernel(p_ref, w_ref, pre_ref, stats_ref):
    """Pass 1 (multi-tile): pre = patches @ w (bf16 in / f32 acc on the MXU).

    Writes the pre-activation in bf16 and PER-TILE partial channel sum /
    sum-of-squares (no grid-resident accumulator -> "parallel" semantics, so
    v7x can shard the M grid across both TensorCores).  No bias: BatchNorm's
    mean subtraction cancels it exactly.
    """
    acc = jnp.dot(p_ref[...], w_ref[...], preferred_element_type=jnp.float32)
    pre_ref[...] = acc.astype(pre_ref.dtype)
    s = jnp.sum(acc, axis=0, keepdims=True)           # (1, Cp)
    sq = jnp.sum(acc * acc, axis=0, keepdims=True)    # (1, Cp)
    stats_ref[0, :, :] = jnp.concatenate([s, sq], axis=0)   # (2, Cp)


def _bn_lrelu_kernel(pre_ref, stats_ref, g_ref, beta_ref, out_ref,
                     *, m_valid: float):
    """Pass 2: BatchNorm2d (train-mode batch stats, biased var) + LeakyReLU."""
    stats = stats_ref[...]
    inv_m = 1.0 / m_valid
    mean = stats[0:1, :] * inv_m
    var = jnp.maximum(stats[1:2, :] * inv_m - mean * mean, 0.0)
    inv = jax.lax.rsqrt(var + BN_EPS)
    x = pre_ref[...].astype(jnp.float32)
    y = (x - mean) * (inv * g_ref[...]) + beta_ref[...]
    out_ref[...] = jnp.maximum(y, LRELU_SLOPE * y).astype(out_ref.dtype)


def _conv_bias_kernel(p_ref, w_ref, b_ref, out_ref):
    """Final layer: plain Conv2d + bias (no BN, no activation)."""
    acc = jnp.dot(p_ref[...], w_ref[...], preferred_element_type=jnp.float32)
    out_ref[...] = (acc + b_ref[...]).astype(out_ref.dtype)


# ----------------------------- host-side glue --------------------------------


def _round_up(x, m):
    return (x + m - 1) // m * m


@functools.lru_cache(maxsize=1)
def _default_vmem_limit():
    """Per-chip scoped-VMEM budget (conservative fallback for unknown chips)."""
    try:
        kind = jax.devices()[0].device_kind.lower()
    except Exception:
        return 32 * 1024 * 1024
    if "v7" in kind or "7x" in kind:
        return 48 * 1024 * 1024          # 64 MiB physical VMEM -> leave headroom
    if any(t in kind for t in ("v5 lite", "v5e", "v5lite", "v6")):
        return 96 * 1024 * 1024          # 128 MiB physical VMEM
    return 32 * 1024 * 1024


def _pick_tile_m(m, kkc, cp, vmem_budget, requested=None):
    """VMEM-aware M-tile choice; returns (tile_m, padded_m)."""
    def per_step_bytes(t):
        # double-buffered bf16 patch tile + (conservatively double-buffered)
        # bf16 weight + double-buffered bf16 output tiles + small param blocks.
        return 2 * (t * kkc * 2) + 2 * (kkc * cp * 2) + 4 * (t * cp * 2) + 8 * cp * 4

    if requested is not None:
        tm = _round_up(int(requested), 8)
    else:
        tm = next((t for t in _TILE_CANDIDATES if per_step_bytes(t) <= vmem_budget), 8)
    tm = min(tm, _round_up(m, 8))
    while tm > 8 and per_step_bytes(tm) > vmem_budget:
        tm = _round_up(tm // 2, 8)
    m_pad = _round_up(m, tm)
    return tm, m_pad


def _im2col(x_nhwc, compute_dtype):
    """(B,H,W,Cin) bf16 -> (B*Ho*Wo, K*K*Cin) patches for the k=4,s=2,p=1 conv.

    Taps are laid out (kh, kw, cin)-major so a single deep matmul against the
    folded weight performs the whole convolution.
    """
    B, H, W, Cin = x_nhwc.shape
    Ho = (H + 2 * PAD - K) // STRIDE + 1
    Wo = (W + 2 * PAD - K) // STRIDE + 1
    xp = jnp.pad(x_nhwc.astype(compute_dtype),
                 ((0, 0), (PAD, PAD), (PAD, PAD), (0, 0)))
    cols = [xp[:, kh:kh + STRIDE * (Ho - 1) + 1:STRIDE,
               kw:kw + STRIDE * (Wo - 1) + 1:STRIDE, :]
            for kh in range(K) for kw in range(K)]
    patches = jnp.concatenate(cols, axis=-1)          # (B, Ho, Wo, K*K*Cin)
    # TODO(synk): gather the halo inside the kernel (memory_space=pl.ANY +
    # manual make_async_copy) to avoid materializing the 4x-amplified patch
    # array through HBM.
    return patches.reshape(B * Ho * Wo, K * K * Cin), Ho, Wo


def prepare_block_params(w, b, gamma=None, beta=None,
                         compute_dtype=jnp.bfloat16):
    """Fold / pad parameters once (outside the per-step forward).

    w: (Cout, Cin, K, K) PyTorch Conv2d weight; b: (Cout,)
    gamma/beta: (Cout,) BatchNorm2d affine params (ignored for the final layer).
    """
    cout, cin, kh, kw = w.shape
    assert (kh, kw) == (K, K)
    cp = _round_up(cout, LANE)
    # patches are (kh, kw, cin)-major -> weight must be folded the same way.
    wf = jnp.transpose(w, (2, 3, 1, 0)).reshape(K * K * cin, cout)
    wf = jnp.pad(wf, ((0, 0), (0, cp - cout))).astype(compute_dtype)
    bp = jnp.pad(b, (0, cp - cout)).reshape(1, cp).astype(jnp.float32)
    if gamma is None:
        gamma = jnp.ones((cout,), jnp.float32)
    if beta is None:
        beta = jnp.zeros((cout,), jnp.float32)
    gp = jnp.pad(gamma, (0, cp - cout)).reshape(1, cp).astype(jnp.float32)
    bt = jnp.pad(beta, (0, cp - cout)).reshape(1, cp).astype(jnp.float32)
    return dict(w=wf, b=bp, gamma=gp, beta=bt,
                cin=cin, cout=cout, cout_pad=cp, compute_dtype=compute_dtype)


def discriminator_block(x_nhwc, prep, *, final_layer=False, tile_m=None):
    """Forward of one DiscriminatorBlock on NHWC input; returns NHWC bf16.

    TODO(synk): BN uses train-mode batch statistics (matches PyTorch .train());
    eval-mode running_mean/var buffers are not modeled.
    """
    B, H, W, Cin = x_nhwc.shape
    assert Cin == prep["cin"]
    cout, cp = prep["cout"], prep["cout_pad"]

    patches, Ho, Wo = _im2col(x_nhwc, prep["compute_dtype"])
    M, KKC = patches.shape

    vmem_limit = _default_vmem_limit()
    tm, m_pad = _pick_tile_m(M, KKC, cp, int(vmem_limit * 0.9), tile_m)
    if m_pad != M:
        # Zero rows: contribute 0 to sum / sum-of-squares (no bias pre-BN),
        # so batch statistics divided by the true M stay exact.
        patches = jnp.pad(patches, ((0, m_pad - M), (0, 0)))
    nt = m_pad // tm

    patch_spec = pl.BlockSpec((tm, KKC), lambda i: (i, 0))
    w_spec = pl.BlockSpec((KKC, cp), lambda i: (0, 0))
    vec_spec = pl.BlockSpec((1, cp), lambda i: (0, 0))
    out_spec = pl.BlockSpec((tm, cp), lambda i: (i, 0))
    cparams = pltpu.CompilerParams(dimension_semantics=("parallel",),
                                   vmem_limit_bytes=vmem_limit)

    if final_layer:
        out = pl.pallas_call(
            _conv_bias_kernel,
            grid=(nt,),
            in_specs=[patch_spec, w_spec, vec_spec],
            out_specs=out_spec,
            out_shape=jax.ShapeDtypeStruct((m_pad, cp), jnp.bfloat16),
            compiler_params=cparams,
        )(patches, prep["w"], prep["b"])
    elif nt == 1:
        # Whole batch fits in one tile: fully fused, no `pre` intermediate.
        out = pl.pallas_call(
            functools.partial(_fused_conv_bn_lrelu_kernel, m_valid=float(M)),
            grid=(1,),
            in_specs=[patch_spec, w_spec, vec_spec, vec_spec],
            out_specs=out_spec,
            out_shape=jax.ShapeDtypeStruct((m_pad, cp), jnp.bfloat16),
            compiler_params=cparams,
        )(patches, prep["w"], prep["gamma"], prep["beta"])
    else:
        # Pass 1 (parallel over M tiles): conv matmul, bf16 pre-activation,
        # per-tile partial channel stats.
        pre, stats_part = pl.pallas_call(
            _conv_stats_kernel,
            grid=(nt,),
            in_specs=[patch_spec, w_spec],
            out_specs=(out_spec,
                       pl.BlockSpec((1, 2, cp), lambda i: (i, 0, 0))),
            out_shape=(jax.ShapeDtypeStruct((m_pad, cp), jnp.bfloat16),
                       jax.ShapeDtypeStruct((nt, 2, cp), jnp.float32)),
            compiler_params=cparams,
        )(patches, prep["w"])

        stats = jnp.sum(stats_part, axis=0)            # tiny (2, cp) XLA reduce

        # Pass 2 (parallel): normalize with the global stats + LeakyReLU.
        # The bf16 `pre` buffer is aliased as the output (no extra HBM alloc).
        out = pl.pallas_call(
            functools.partial(_bn_lrelu_kernel, m_valid=float(M)),
            grid=(nt,),
            in_specs=[out_spec,
                      pl.BlockSpec((2, cp), lambda i: (0, 0)),
                      vec_spec, vec_spec],
            out_specs=out_spec,
            out_shape=jax.ShapeDtypeStruct((m_pad, cp), jnp.bfloat16),
            input_output_aliases={0: 0},
            compiler_params=cparams,
        )(pre, stats, prep["gamma"], prep["beta"])

    out = out[:M, :cout].reshape(B, Ho, Wo, cout)      # drop row/lane padding
    return out                                         # NHWC bf16


# ----------------------------- demo / self-test -------------------------------


def init_block_params(key, cin, cout):
    k1, k2, k3, k4 = jax.random.split(key, 4)
    w = 0.02 * jax.random.normal(k1, (cout, cin, K, K), jnp.float32)
    b = 0.02 * jax.random.normal(k2, (cout,), jnp.float32)
    gamma = 1.0 + 0.1 * jax.random.normal(k3, (cout,), jnp.float32)
    beta = 0.1 * jax.random.normal(k4, (cout,), jnp.float32)
    return w, b, gamma, beta


def _reference_block(x_nchw, w, b, gamma, beta, final_layer):
    """Pure-JAX f32 reference matching the PyTorch module (train-mode BN)."""
    y = jax.lax.conv_general_dilated(
        x_nchw, w, window_strides=(STRIDE, STRIDE),
        padding=((PAD, PAD), (PAD, PAD)),
        dimension_numbers=("NCHW", "OIHW", "NCHW"))
    y = y + b.reshape(1, -1, 1, 1)
    if final_layer:
        return y
    mean = jnp.mean(y, axis=(0, 2, 3), keepdims=True)
    var = jnp.mean((y - mean) ** 2, axis=(0, 2, 3), keepdims=True)
    y = (y - mean) * jax.lax.rsqrt(var + BN_EPS)
    y = y * gamma.reshape(1, -1, 1, 1) + beta.reshape(1, -1, 1, 1)
    return jnp.where(y > 0, y, LRELU_SLOPE * y)


if __name__ == "__main__":
    key = jax.random.PRNGKey(0)
    B, Cin, H, W = 2, 4, 16, 16
    hidden = 16

    kx, k1, k2, k3 = jax.random.split(key, 4)
    x = jax.random.normal(kx, (B, Cin, H, W), jnp.float32)

    # Small 3-block discriminator: 4 -> 16 -> 32 (Conv+BN+LeakyReLU) -> 1 (final).
    w1, b1, g1, be1 = init_block_params(k1, Cin, hidden)
    w2, b2, g2, be2 = init_block_params(k2, hidden, hidden * 2)
    w3, b3, _, _ = init_block_params(k3, hidden * 2, 1)

    p1 = prepare_block_params(w1, b1, g1, be1)
    p2 = prepare_block_params(w2, b2, g2, be2)
    p3 = prepare_block_params(w3, b3)

    @jax.jit
    def forward(inp):
        # NCHW f32 -> NHWC bf16 once at the discriminator boundary; all
        # inter-block activations stay NHWC bf16 (no per-block transposes).
        h = jnp.transpose(inp, (0, 2, 3, 1)).astype(jnp.bfloat16)
        # tile_m=64 on the first block forces a multi-tile grid so the
        # parallel per-tile-stats + bf16-pre two-pass path is exercised.
        h1 = discriminator_block(h, p1, final_layer=False, tile_m=64)
        h2 = discriminator_block(h1, p2, final_layer=False)   # fused single-tile
        h3 = discriminator_block(h2, p3, final_layer=True)    # final conv
        out = jnp.transpose(h3, (0, 3, 1, 2)).astype(jnp.float32)
        return h1, h2, h3, out

    h1, h2, h3, out = jax.block_until_ready(forward(x))

    assert h1.shape == (B, H // 2, W // 2, hidden), h1.shape
    assert h2.shape == (B, H // 4, W // 4, hidden * 2), h2.shape
    assert h3.shape == (B, H // 8, W // 8, 1), h3.shape
    assert out.shape == (B, 1, H // 8, W // 8), out.shape
    for t in (h1, h2, h3, out):
        assert bool(jnp.isfinite(t.astype(jnp.float32)).all())

    # Numerical smoke test against a pure-JAX f32 reference (bf16 tolerance).
    h1_f = jnp.transpose(h1.astype(jnp.float32), (0, 3, 1, 2))
    h2_f = jnp.transpose(h2.astype(jnp.float32), (0, 3, 1, 2))
    r1 = _reference_block(x, w1, b1, g1, be1, False)
    r2 = _reference_block(h1_f, w2, b2, g2, be2, False)
    r3 = _reference_block(h2_f, w3, b3, None, None, True)
    for got, want in ((h1_f, r1), (h2_f, r2), (out, r3)):
        err = float(jnp.max(jnp.abs(got - want)))
        assert err < 0.25, f"max abs error {err}"

    print("KERNEL_OK")
</pallas_src>

<mosaic_0001>
module attributes {stable_mosaic.version = 11 : i64} {
  func.func @_conv_stats_kernel(%arg0: i32, %arg1: memref<64x64xbf16, #tpu.memory_space<vmem>>, %arg2: memref<64x128xbf16, #tpu.memory_space<vmem>>, %arg3: memref<64x128xbf16, #tpu.memory_space<vmem>>, %arg4: memref<1x2x128xf32, #tpu.memory_space<vmem>>) attributes {dimension_semantics = [#tpu.dimension_semantics<parallel>], iteration_bounds = array<i64: 2>, scalar_prefetch = 0 : i64, scratch_operands = 0 : i64, tpu.core_type = #tpu.core_type<tc>, window_params = [{transform_indices = @transform_0, window_bounds = array<i64: 64, 64>}, {pipeline_mode = #tpu.pipeline_mode<synchronous>, transform_indices = @transform_1, window_bounds = array<i64: 64, 128>}, {transform_indices = @transform_2, window_bounds = array<i64: 64, 128>}, {transform_indices = @transform_3, window_bounds = array<i64: 1, 2, 128>}]} {
    %c0 = arith.constant 0 : index
    %c0_0 = arith.constant 0 : index
    %0 = vector.load %arg1[%c0, %c0_0] : memref<64x64xbf16, #tpu.memory_space<vmem>>, vector<64x64xbf16>
    %c0_1 = arith.constant 0 : index
    %c0_2 = arith.constant 0 : index
    %1 = vector.load %arg2[%c0_1, %c0_2] : memref<64x128xbf16, #tpu.memory_space<vmem>>, vector<64x128xbf16>
    %cst = arith.constant dense<0.000000e+00> : vector<64x128xf32>
    %2 = tpu.matmul %0, %1, %cst {dimension_numbers = #tpu.dot_dimension_numbers<[1], [0], [0], [1], [0, 0, 1, 1], [], []>} : vector<64x64xbf16>, vector<64x128xbf16>, vector<64x128xf32> -> vector<64x128xf32>
    %3 = arith.truncf %2 : vector<64x128xf32> to vector<64x128xbf16>
    %c0_3 = arith.constant 0 : index
    %c0_4 = arith.constant 0 : index
    %4 = vector.load %arg3[%c0_3, %c0_4] : memref<64x128xbf16, #tpu.memory_space<vmem>>, vector<64x128xbf16>
    tpu.vector_store %arg3[%c0_3, %c0_4], %3 {strides = array<i32>} : memref<64x128xbf16, #tpu.memory_space<vmem>>, vector<64x128xbf16>,
    %cst_5 = arith.constant dense<0.000000e+00> : vector<128xf32>
    %5 = vector.multi_reduction <add>, %2, %cst_5 [0] : vector<64x128xf32> to vector<128xf32>
    %6 = vector.shape_cast %5 : vector<128xf32> to vector<1x128xf32>
    %7 = arith.mulf %2, %2 : vector<64x128xf32>
    %cst_6 = arith.constant dense<0.000000e+00> : vector<128xf32>
    %8 = vector.multi_reduction <add>, %7, %cst_6 [0] : vector<64x128xf32> to vector<128xf32>
    %9 = vector.shape_cast %8 : vector<128xf32> to vector<1x128xf32>
    %10 = tpu.concatenate %6, %9 in 0 : vector<1x128xf32>, vector<1x128xf32> -> vector<2x128xf32>
    %c0_7 = arith.constant 0 : index
    %c0_8 = arith.constant 0 : index
    %c0_9 = arith.constant 0 : index
    %11 = vector.load %arg4[%c0_7, %c0_8, %c0_9] : memref<1x2x128xf32, #tpu.memory_space<vmem>>, vector<1x2x128xf32>
    %12 = vector.shape_cast %11 : vector<1x2x128xf32> to vector<2x128xf32>
    %13 = vector.shape_cast %10 : vector<2x128xf32> to vector<1x2x128xf32>
    tpu.vector_store %arg4[%c0_7, %c0_8, %c0_9], %13 {strides = array<i32>} : memref<1x2x128xf32, #tpu.memory_space<vmem>>, vector<1x2x128xf32>,
    return
  }
  func.func @transform_0(%arg0: i32) -> (i32, i32) {
    %c0_i32 = arith.constant 0 : i32
    %c0_i32_0 = arith.constant 0 : i32
    return %arg0, %c0_i32 : i32, i32
  }
  func.func @transform_1(%arg0: i32) -> (i32, i32) {
    %c0_i32 = arith.constant 0 : i32
    %c0_i32_0 = arith.constant 0 : i32
    %c0_i32_1 = arith.constant 0 : i32
    return %c0_i32, %c0_i32_0 : i32, i32
  }
  func.func @transform_2(%arg0: i32) -> (i32, i32) {
    %c0_i32 = arith.constant 0 : i32
    %c0_i32_0 = arith.constant 0 : i32
    return %arg0, %c0_i32 : i32, i32
  }
  func.func @transform_3(%arg0: i32) -> (i32, i32, i32) {
    %c0_i32 = arith.constant 0 : i32
    %c0_i32_0 = arith.constant 0 : i32
    %c0_i32_1 = arith.constant 0 : i32
    return %arg0, %c0_i32, %c0_i32_0 : i32, i32, i32
  }
}

module attributes {stable_mosaic.version = 11 : i64} {
  func.func @_bn_lrelu_kernel(%arg0: i32, %arg1: memref<64x128xbf16, #tpu.memory_space<vmem>>, %arg2: memref<2x128xf32, #tpu.memory_space<vmem>>, %arg3: memref<1x128xf32, #tpu.memory_space<vmem>>, %arg4: memref<1x128xf32, #tpu.memory_space<vmem>>, %arg5: memref<64x128xbf16, #tpu.memory_space<vmem>>) attributes {dimension_semantics = [#tpu.dimension_semantics<parallel>], iteration_bounds = array<i64: 2>, scalar_prefetch = 0 : i64, scratch_operands = 0 : i64, tpu.core_type = #tpu.core_type<tc>, window_params = [{transform_indices = @transform_0, window_bounds = array<i64: 64, 128>}, {pipeline_mode = #tpu.pipeline_mode<synchronous>, transform_indices = @transform_1, window_bounds = array<i64: 2, 128>}, {pipeline_mode = #tpu.pipeline_mode<synchronous>, transform_indices = @transform_2, window_bounds = array<i64: 1, 128>}, {pipeline_mode = #tpu.pipeline_mode<synchronous>, transform_indices = @transform_3, window_bounds = array<i64: 1, 128>}, {transform_indices = @transform_4, window_bounds = array<i64: 64, 128>}]} {
    %c0 = arith.constant 0 : index
    %c0_0 = arith.constant 0 : index
    %0 = vector.load %arg2[%c0, %c0_0] : memref<2x128xf32, #tpu.memory_space<vmem>>, vector<2x128xf32>
    %1 = vector.extract_strided_slice %0 {offsets = [0, 0], sizes = [1, 128], strides = [1, 1]} : vector<2x128xf32> to vector<1x128xf32>
    %cst = arith.constant 7.812500e-03 : f32
    %2 = vector.broadcast %cst : f32 to vector<1x128xf32>
    %3 = arith.mulf %1, %2 : vector<1x128xf32>
    %4 = vector.extract_strided_slice %0 {offsets = [1, 0], sizes = [1, 128], strides = [1, 1]} : vector<2x128xf32> to vector<1x128xf32>
    %cst_1 = arith.constant 7.812500e-03 : f32
    %5 = vector.broadcast %cst_1 : f32 to vector<1x128xf32>
    %6 = arith.mulf %4, %5 : vector<1x128xf32>
    %7 = arith.mulf %3, %3 : vector<1x128xf32>
    %8 = arith.subf %6, %7 : vector<1x128xf32>
    %cst_2 = arith.constant 0.000000e+00 : f32
    %9 = vector.broadcast %cst_2 : f32 to vector<1x128xf32>
    %10 = arith.maximumf %8, %9 : vector<1x128xf32>
    %cst_3 = arith.constant 9.99999974E-6 : f32
    %11 = vector.broadcast %cst_3 : f32 to vector<1x128xf32>
    %12 = arith.addf %10, %11 : vector<1x128xf32>
    %13 = math.rsqrt %12 : vector<1x128xf32>
    %c0_4 = arith.constant 0 : index
    %c0_5 = arith.constant 0 : index
    %14 = vector.load %arg1[%c0_4, %c0_5] : memref<64x128xbf16, #tpu.memory_space<vmem>>, vector<64x128xbf16>
    %15 = arith.extf %14 : vector<64x128xbf16> to vector<64x128xf32>
    %16 = vector.broadcast %3 : vector<1x128xf32> to vector<64x128xf32>
    %17 = arith.subf %15, %16 : vector<64x128xf32>
    %c0_6 = arith.constant 0 : index
    %c0_7 = arith.constant 0 : index
    %18 = vector.load %arg3[%c0_6, %c0_7] : memref<1x128xf32, #tpu.memory_space<vmem>>, vector<1x128xf32>
    %19 = arith.mulf %13, %18 : vector<1x128xf32>
    %20 = vector.broadcast %19 : vector<1x128xf32> to vector<64x128xf32>
    %21 = arith.mulf %17, %20 : vector<64x128xf32>
    %c0_8 = arith.constant 0 : index
    %c0_9 = arith.constant 0 : index
    %22 = vector.load %arg4[%c0_8, %c0_9] : memref<1x128xf32, #tpu.memory_space<vmem>>, vector<1x128xf32>
    %23 = vector.broadcast %22 : vector<1x128xf32> to vector<64x128xf32>
    %24 = arith.addf %21, %23 : vector<64x128xf32>
    %cst_10 = arith.constant 2.000000e-01 : f32
    %25 = vector.broadcast %cst_10 : f32 to vector<64x128xf32>
    %26 = arith.mulf %25, %24 : vector<64x128xf32>
    %27 = arith.maximumf %24, %26 : vector<64x128xf32>
    %28 = arith.truncf %27 : vector<64x128xf32> to vector<64x128xbf16>
    %c0_11 = arith.constant 0 : index
    %c0_12 = arith.constant 0 : index
    %29 = vector.load %arg5[%c0_11, %c0_12] : memref<64x128xbf16, #tpu.memory_space<vmem>>, vector<64x128xbf16>
    tpu.vector_store %arg5[%c0_11, %c0_12], %28 {strides = array<i32>} : memref<64x128xbf16, #tpu.memory_space<vmem>>, vector<64x128xbf16>,
    return
  }
  func.func @transform_0(%arg0: i32) -> (i32, i32) {
    %c0_i32 = arith.constant 0 : i32
    %c0_i32_0 = arith.constant 0 : i32
    return %arg0, %c0_i32 : i32, i32
  }
  func.func @transform_1(%arg0: i32) -> (i32, i32) {
    %c0_i32 = arith.constant 0 : i32
    %c0_i32_0 = arith.constant 0 : i32
    %c0_i32_1 = arith.constant 0 : i32
    return %c0_i32, %c0_i32_0 : i32, i32
  }
  func.func @transform_2(%arg0: i32) -> (i32, i32) {
    %c0_i32 = arith.constant 0 : i32
    %c0_i32_0 = arith.constant 0 : i32
    %c0_i32_1 = arith.constant 0 : i32
    return %c0_i32, %c0_i32_0 : i32, i32
  }
  func.func @transform_3(%arg0: i32) -> (i32, i32) {
    %c0_i32 = arith.constant 0 : i32
    %c0_i32_0 = arith.constant 0 : i32
    %c0_i32_1 = arith.constant 0 : i32
    return %c0_i32, %c0_i32_0 : i32, i32
  }
  func.func @transform_4(%arg0: i32) -> (i32, i32) {
    %c0_i32 = arith.constant 0 : i32
    %c0_i32_0 = arith.constant 0 : i32
    return %arg0, %c0_i32 : i32, i32
  }
}

module attributes {stable_mosaic.version = 11 : i64} {
  func.func @_fused_conv_bn_lrelu_kernel(%arg0: i32, %arg1: memref<32x256xbf16, #tpu.memory_space<vmem>>, %arg2: memref<256x128xbf16, #tpu.memory_space<vmem>>, %arg3: memref<1x128xf32, #tpu.memory_space<vmem>>, %arg4: memref<1x128xf32, #tpu.memory_space<vmem>>, %arg5: memref<32x128xbf16, #tpu.memory_space<vmem>>) attributes {dimension_semantics = [#tpu.dimension_semantics<parallel>], iteration_bounds = array<i64: 1>, scalar_prefetch = 0 : i64, scratch_operands = 0 : i64, tpu.core_type = #tpu.core_type<tc>, window_params = [{transform_indices = @transform_0, window_bounds = array<i64: 32, 256>}, {pipeline_mode = #tpu.pipeline_mode<synchronous>, transform_indices = @transform_1, window_bounds = array<i64: 256, 128>}, {pipeline_mode = #tpu.pipeline_mode<synchronous>, transform_indices = @transform_2, window_bounds = array<i64: 1, 128>}, {pipeline_mode = #tpu.pipeline_mode<synchronous>, transform_indices = @transform_3, window_bounds = array<i64: 1, 128>}, {transform_indices = @transform_4, window_bounds = array<i64: 32, 128>}]} {
    %c0 = arith.constant 0 : index
    %c0_0 = arith.constant 0 : index
    %0 = vector.load %arg1[%c0, %c0_0] : memref<32x256xbf16, #tpu.memory_space<vmem>>, vector<32x256xbf16>
    %c0_1 = arith.constant 0 : index
    %c0_2 = arith.constant 0 : index
    %1 = vector.load %arg2[%c0_1, %c0_2] : memref<256x128xbf16, #tpu.memory_space<vmem>>, vector<256x128xbf16>
    %cst = arith.constant dense<0.000000e+00> : vector<32x128xf32>
    %2 = tpu.matmul %0, %1, %cst {dimension_numbers = #tpu.dot_dimension_numbers<[1], [0], [0], [1], [0, 0, 1, 1], [], []>} : vector<32x256xbf16>, vector<256x128xbf16>, vector<32x128xf32> -> vector<32x128xf32>
    %cst_3 = arith.constant dense<0.000000e+00> : vector<128xf32>
    %3 = vector.multi_reduction <add>, %2, %cst_3 [0] : vector<32x128xf32> to vector<128xf32>
    %4 = vector.shape_cast %3 : vector<128xf32> to vector<1x128xf32>
    %cst_4 = arith.constant 3.125000e-02 : f32
    %5 = vector.broadcast %cst_4 : f32 to vector<1x128xf32>
    %6 = arith.mulf %4, %5 : vector<1x128xf32>
    %7 = arith.mulf %2, %2 : vector<32x128xf32>
    %cst_5 = arith.constant dense<0.000000e+00> : vector<128xf32>
    %8 = vector.multi_reduction <add>, %7, %cst_5 [0] : vector<32x128xf32> to vector<128xf32>
    %9 = vector.shape_cast %8 : vector<128xf32> to vector<1x128xf32>
    %cst_6 = arith.constant 3.125000e-02 : f32
    %10 = vector.broadcast %cst_6 : f32 to vector<1x128xf32>
    %11 = arith.mulf %9, %10 : vector<1x128xf32>
    %12 = arith.mulf %6, %6 : vector<1x128xf32>
    %13 = arith.subf %11, %12 : vector<1x128xf32>
    %cst_7 = arith.constant 0.000000e+00 : f32
    %14 = vector.broadcast %cst_7 : f32 to vector<1x128xf32>
    %15 = arith.maximumf %13, %14 : vector<1x128xf32>
    %cst_8 = arith.constant 9.99999974E-6 : f32
    %16 = vector.broadcast %cst_8 : f32 to vector<1x128xf32>
    %17 = arith.addf %15, %16 : vector<1x128xf32>
    %18 = math.rsqrt %17 : vector<1x128xf32>
    %19 = vector.broadcast %6 : vector<1x128xf32> to vector<32x128xf32>
    %20 = arith.subf %2, %19 : vector<32x128xf32>
    %c0_9 = arith.constant 0 : index
    %c0_10 = arith.constant 0 : index
    %21 = vector.load %arg3[%c0_9, %c0_10] : memref<1x128xf32, #tpu.memory_space<vmem>>, vector<1x128xf32>
    %22 = arith.mulf %18, %21 : vector<1x128xf32>
    %23 = vector.broadcast %22 : vector<1x128xf32> to vector<32x128xf32>
    %24 = arith.mulf %20, %23 : vector<32x128xf32>
    %c0_11 = arith.constant 0 : index
    %c0_12 = arith.constant 0 : index
    %25 = vector.load %arg4[%c0_11, %c0_12] : memref<1x128xf32, #tpu.memory_space<vmem>>, vector<1x128xf32>
    %26 = vector.broadcast %25 : vector<1x128xf32> to vector<32x128xf32>
    %27 = arith.addf %24, %26 : vector<32x128xf32>
    %cst_13 = arith.constant 2.000000e-01 : f32
    %28 = vector.broadcast %cst_13 : f32 to vector<32x128xf32>
    %29 = arith.mulf %28, %27 : vector<32x128xf32>
    %30 = arith.maximumf %27, %29 : vector<32x128xf32>
    %31 = arith.truncf %30 : vector<32x128xf32> to vector<32x128xbf16>
    %c0_14 = arith.constant 0 : index
    %c0_15 = arith.constant 0 : index
    %32 = vector.load %arg5[%c0_14, %c0_15] : memref<32x128xbf16, #tpu.memory_space<vmem>>, vector<32x128xbf16>
    tpu.vector_store %arg5[%c0_14, %c0_15], %31 {strides = array<i32>} : memref<32x128xbf16, #tpu.memory_space<vmem>>, vector<32x128xbf16>,
    return
  }
  func.func @transform_0(%arg0: i32) -> (i32, i32) {
    %c0_i32 = arith.constant 0 : i32
    %c0_i32_0 = arith.constant 0 : i32
    return %arg0, %c0_i32 : i32, i32
  }
  func.func @transform_1(%arg0: i32) -> (i32, i32) {
    %c0_i32 = arith.constant 0 : i32
    %c0_i32_0 = arith.constant 0 : i32
    %c0_i32_1 = arith.constant 0 : i32
    return %c0_i32, %c0_i32_0 : i32, i32
  }
  func.func @transform_2(%arg0: i32) -> (i32, i32) {
    %c0_i32 = arith.constant 0 : i32
    %c0_i32_0 = arith.constant 0 : i32
    %c0_i32_1 = arith.constant 0 : i32
    return %c0_i32, %c0_i32_0 : i32, i32
  }
  func.func @transform_3(%arg0: i32) -> (i32, i32) {
    %c0_i32 = arith.constant 0 : i32
    %c0_i32_0 = arith.constant 0 : i32
    %c0_i32_1 = arith.constant 0 : i32
    return %c0_i32, %c0_i32_0 : i32, i32
  }
  func.func @transform_4(%arg0: i32) -> (i32, i32) {
    %c0_i32 = arith.constant 0 : i32
    %c0_i32_0 = arith.constant 0 : i32
    return %arg0, %c0_i32 : i32, i32
  }
}

module attributes {stable_mosaic.version = 11 : i64} {
  func.func @_conv_bias_kernel(%arg0: i32, %arg1: memref<8x512xbf16, #tpu.memory_space<vmem>>, %arg2: memref<512x128xbf16, #tpu.memory_space<vmem>>, %arg3: memref<1x128xf32, #tpu.memory_space<vmem>>, %arg4: memref<8x128xbf16, #tpu.memory_space<vmem>>) attributes {dimension_semantics = [#tpu.dimension_semantics<parallel>], iteration_bounds = array<i64: 1>, scalar_prefetch = 0 : i64, scratch_operands = 0 : i64, tpu.core_type = #tpu.core_type<tc>, window_params = [{transform_indices = @transform_0, window_bounds = array<i64: 8, 512>}, {pipeline_mode = #tpu.pipeline_mode<synchronous>, transform_indices = @transform_1, window_bounds = array<i64: 512, 128>}, {pipeline_mode = #tpu.pipeline_mode<synchronous>, transform_indices = @transform_2, window_bounds = array<i64: 1, 128>}, {transform_indices = @transform_3, window_bounds = array<i64: 8, 128>}]} {
    %c0 = arith.constant 0 : index
    %c0_0 = arith.constant 0 : index
    %0 = vector.load %arg1[%c0, %c0_0] : memref<8x512xbf16, #tpu.memory_space<vmem>>, vector<8x512xbf16>
    %c0_1 = arith.constant 0 : index
    %c0_2 = arith.constant 0 : index
    %1 = vector.load %arg2[%c0_1, %c0_2] : memref<512x128xbf16, #tpu.memory_space<vmem>>, vector<512x128xbf16>
    %cst = arith.constant dense<0.000000e+00> : vector<8x128xf32>
    %2 = tpu.matmul %0, %1, %cst {dimension_numbers = #tpu.dot_dimension_numbers<[1], [0], [0], [1], [0, 0, 1, 1], [], []>} : vector<8x512xbf16>, vector<512x128xbf16>, vector<8x128xf32> -> vector<8x128xf32>
    %c0_3 = arith.constant 0 : index
    %c0_4 = arith.constant 0 : index
    %3 = vector.load %arg3[%c0_3, %c0_4] : memref<1x128xf32, #tpu.memory_space<vmem>>, vector<1x128xf32>
    %4 = vector.broadcast %3 : vector<1x128xf32> to vector<8x128xf32>
    %5 = arith.addf %2, %4 : vector<8x128xf32>
    %6 = arith.truncf %5 : vector<8x128xf32> to vector<8x128xbf16>
    %c0_5 = arith.constant 0 : index
    %c0_6 = arith.constant 0 : index
    %7 = vector.load %arg4[%c0_5, %c0_6] : memref<8x128xbf16, #tpu.memory_space<vmem>>, vector<8x128xbf16>
    tpu.vector_store %arg4[%c0_5, %c0_6], %6 {strides = array<i32>} : memref<8x128xbf16, #tpu.memory_space<vmem>>, vector<8x128xbf16>,
    return
  }
  func.func @transform_0(%arg0: i32) -> (i32, i32) {
    %c0_i32 = arith.constant 0 : i32
    %c0_i32_0 = arith.constant 0 : i32
    return %arg0, %c0_i32 : i32, i32
  }
  func.func @transform_1(%arg0: i32) -> (i32, i32) {
    %c0_i32 = arith.constant 0 : i32
    %c0_i32_0 = arith.constant 0 : i32
    %c0_i32_1 = arith.constant 0 : i32
    return %c0_i32, %c0_i32_0 : i32, i32
  }
  func.func @transform_2(%arg0: i32) -> (i32, i32) {
    %c0_i32 = arith.constant 0 : i32
    %c0_i32_0 = arith.constant 0 : i32
    %c0_i32_1 = arith.constant 0 : i32
    return %c0_i32, %c0_i32_0 : i32, i32
  }
  func.func @transform_3(%arg0: i32) -> (i32, i32) {
    %c0_i32 = arith.constant 0 : i32
    %c0_i32_0 = arith.constant 0 : i32
    return %arg0, %c0_i32 : i32, i32
  }
}

</mosaic_0001>

<bundles_post_ra>
// kernel: forward.5
= control target key start
LH: loop header
LB: loop body
LE: loop exit
PB: predicated region body
PF: predicated region fallthrough
CT: control target
= control target key end

     0   :  { %s500_s15 = smov 0   ;;  %s533_s0 = inlined_call_operand.vmem [shape: bf16[128,128], index: 0, kind: input, shape index: {}, may-alias: {0,4}]   ;;  %s534_s1 = inlined_call_operand.vmem [shape: f32[2,128], index: 1, kind: input, shape index: {}]   ;;  %s535_s2 = inlined_call_operand.vmem [shape: f32[1,128], index: 2, kind: input, shape index: {}]   ;;  %s536_s3 = inlined_call_operand.vmem [shape: f32[1,128], index: 3, kind: input, shape index: {}]   ;;  %s537_s4 = inlined_call_operand.vmem [shape: bf16[128,128], index: 4, kind: output, shape index: {}, may-alias: {0,4}]  }
   0x1 LB: > { %s386_s16 = sadd.s32 4294967295, %s473_s15   ;;  %p390_p0 = scmp.ge.s32.totalorder %s473_s15, 1  ;;  %s473_s15 = sphi %s500_s15, %s14_s15  }
   0x2   : > { %p163_p1 = scmp.lt.s32.totalorder %s473_s15, 3 }
   0x4   : > { %p164_p2 = pnand %p390_p0, %p163_p1 }
   0x5   : > { %s391_s17 = sshll.u32 (!%p164_p2), %s386_s16, 3  ;;  %v201_v0 = vld [vmem:[%s534_s1] sm:$0x3] (!%p164_p2)  ;;  %v227_v5 = vlaneseq (!%p164_p2) }
   0x6   : > { %167 = sbr.rel (%p164_p2) target bundleno = 47 (0x2f), region = 36  ;;  %v202_v1 = vmul.f32 (!%p164_p2), 0.0078125, %v201_v0  ;;  %p190_p3 = scmp.lt.s32.totalorder (!%p164_p2), %s391_s17, 15  ;;  %v395_v23 = vld [vmem:[%s535_s2] ss:$0 sm:$0xff] (!%p164_p2) }
   0x7   : > { %v228_v8 = vshrl.u32 (!%p164_p2), %v227_v5, 7  ;;  %v396_v36 = vld [vmem:[%s536_s3] ss:$0 sm:$0xff] (!%p164_p2) }
   0x8   : > { %v203_v2 = vmul.f32 (!%p164_p2), %v202_v1, %v202_v1 }
   0x9   : > { %v229_v9 = vsub.s32 (!%p164_p2), 0, %v228_v8  ;;  %v249_v24 = vsub.s32 (!%p164_p2), 1, %v228_v8 }
   0xa   : > { %v205_v3 = vrot.slane (!%p164_p2), %v203_v2, 7 }
   0xb   : > { %v230_v15 = vrot.slane (!%p164_p2), %v202_v1, %v229_v9 }
   0xc   : > { %v207_v4 = vsub.f32 (!%p164_p2), %v202_v1, %v205_v3 }
   0xd   : > { %s539_s17 = smov (!%p190_p3, %s391_s17), 15 }
   0xe   : > { %v208_v6 = vmax.f32 %v207_v4, 0.0  ;;  %s392_s20 = sshll.u32 %s539_s17, 2 }
   0xf   : > { %s193_s23 = scalar_lea.vmem %s533_s0, %s392_s20  ;;  %s199_s30 = scalar_lea.vmem %s537_s4, %s392_s20 }
  0x10   : > { %v209_v7 = vadd.f32 1e-05, %v208_v6  ;;  %v416_v10 = vld [vmem:[%s193_s23] sm:$0xff]   ;;  %v451_v11 = vld [vmem:[%s193_s23 + $0x8] sm:$0xff]   ;;  %v452_v12 = vld [vmem:[%s193_s23 + $0x10] sm:$0xff]  }
  0x11   : > { %v453_v13 = vld [vmem:[%s193_s23 + $0x18] sm:$0xff]   ;;  %v417_v14 = vunpack.c.l.bf16 %v416_v10  ;;  %v418_v16 = vunpack.c.h.bf16 %v416_v10  ;;  %v421_v17 = vunpack.c.l.bf16 %v451_v11  ;;  %v422_v18 = vunpack.c.h.bf16 %v451_v11 }
  0x12   : > { %465 = vrsqrt.f32 %v209_v7  ;;  %v425_v19 = vunpack.c.l.bf16 %v452_v12  ;;  %v426_v20 = vunpack.c.h.bf16 %v452_v12  ;;  %v429_v21 = vunpack.c.l.bf16 %v453_v13 }
  0x13   : > { %v430_v22 = vunpack.c.h.bf16 %v453_v13  ;;  %v231_v26 = vsub.f32 %v417_v14, %v230_v15  ;;  %v232_v27 = vsub.f32 %v418_v16, %v230_v15  ;;  %v233_v28 = vsub.f32 %v421_v17, %v230_v15 }
  0x14   : > { %v234_v29 = vsub.f32 %v422_v18, %v230_v15  ;;  %v235_v31 = vsub.f32 %v425_v19, %v230_v15  ;;  %v236_v32 = vsub.f32 %v426_v20, %v230_v15  ;;  %v237_v33 = vsub.f32 %v429_v21, %v230_v15 }
  0x15   : > { %v238_v34 = vsub.f32 %v430_v22, %v230_v15 }
  0x1c   : > { %v466_v25 = vpop.eup %465 }
  0x1d   : > { %v246_v30 = vmul.f32 %v466_v25, %v395_v23 }
  0x1f   : > { %v250_v35 = vrot.slane %v246_v30, %v249_v24 }
  0x21   : > { %v251_v37 = vmul.f32 %v250_v35, %v231_v26  ;;  %v252_v38 = vmul.f32 %v250_v35, %v232_v27  ;;  %v253_v39 = vmul.f32 %v250_v35, %v233_v28  ;;  %v254_v40 = vmul.f32 %v250_v35, %v234_v29 }
  0x22   : > { %v255_v41 = vmul.f32 %v250_v35, %v235_v31  ;;  %v256_v42 = vmul.f32 %v250_v35, %v236_v32  ;;  %v257_v43 = vmul.f32 %v250_v35, %v237_v33  ;;  %v258_v44 = vmul.f32 %v250_v35, %v238_v34 }
  0x23   : > { %v266_v45 = vadd.f32 %v396_v36, %v251_v37  ;;  %v267_v46 = vadd.f32 %v396_v36, %v252_v38  ;;  %v268_v47 = vadd.f32 %v396_v36, %v253_v39  ;;  %v269_v48 = vadd.f32 %v396_v36, %v254_v40 }
  0x24   : > { %v270_v49 = vadd.f32 %v396_v36, %v255_v41  ;;  %v271_v50 = vadd.f32 %v396_v36, %v256_v42  ;;  %v272_v51 = vadd.f32 %v396_v36, %v257_v43  ;;  %v273_v52 = vadd.f32 %v396_v36, %v258_v44 }
  0x25   : > { %v274_v53 = vmul.f32 0.2, %v266_v45  ;;  %v275_v54 = vmul.f32 0.2, %v267_v46  ;;  %v276_v55 = vmul.f32 0.2, %v268_v47 }
  0x26   : > { %v277_v56 = vmul.f32 0.2, %v269_v48  ;;  %v278_v57 = vmul.f32 0.2, %v270_v49  ;;  %v279_v58 = vmul.f32 0.2, %v271_v50 }
  0x27   : > { %v282_v59 = vmax.f32 %v266_v45, %v274_v53  ;;  %v283_v60 = vmax.f32 %v267_v46, %v275_v54  ;;  %v284_v61 = vmax.f32 %v268_v47, %v276_v55  ;;  %v280_v62 = vmul.f32 0.2, %v272_v51 }
  0x28   : > { %v285_v63 = vmax.f32 %v269_v48, %v277_v56  ;;  %v286_v0 = vmax.f32 %v270_v49, %v278_v57  ;;  %v287_v1 = vmax.f32 %v271_v50, %v279_v58  ;;  %v281_v2 = vmul.f32 0.2, %v273_v52 }
  0x29   : > { %v434_v3 = vpack.c.bf16 %v283_v60, %v282_v59  ;;  %v288_v4 = vmax.f32 %v272_v51, %v280_v62 }
  0x2a   : > { %v439_v5 = vpack.c.bf16 %v285_v63, %v284_v61  ;;  %v444_v6 = vpack.c.bf16 %v287_v1, %v286_v0  ;;  %v289_v7 = vmax.f32 %v273_v52, %v281_v2 }
  0x2b   : > { %435 = vst [vmem:[%s199_s30] sm:$0xff] %v434_v3  }
  0x2c   : > { %454 = vst [vmem:[%s199_s30 + $0x8] sm:$0xff] %v439_v5   ;;  %455 = vst [vmem:[%s199_s30 + $0x10] sm:$0xff] %v444_v6   ;;  %v449_v8 = vpack.c.bf16 %v289_v7, %v288_v4 }
  0x2e   : > { %456 = vst [vmem:[%s199_s30 + $0x18] sm:$0xff] %v449_v8  }
  0x2f PF: > { %s14_s15 = sadd.s32 1, %s473_s15  }
  0x30   : > { %p11_p4 = scmp.ge.s32.totalorder %s14_s15, 4  }
  0x32   :  { %13 = sbr.rel (!%p11_p4) target bundleno = 1 (0x1), region = 66 }

// kernel: forward.4
= control target key start
LH: loop header
LB: loop body
LE: loop exit
PB: predicated region body
PF: predicated region fallthrough
CT: control target
= control target key end

     0   :  { %s627_s12 = smov 0   ;;  %s671_s0 = inlined_call_operand.vmem [shape: bf16[128,64], index: 0, kind: input, shape index: {}]   ;;  %s672_s1 = inlined_call_operand.vmem [shape: bf16[64,128], index: 1, kind: input, shape index: {}]   ;;  %s673_s2 = inlined_call_operand.vmem [shape: bf16[128,128], index: 2, kind: output, shape index: {0}]   ;;  %s674_s3 = inlined_call_operand.vmem [shape: f32[2,2,128], index: 3, kind: output, shape index: {1}]  }
   0x1 LB: > { %s633_s13 = sadd.s32 4294967295, %s605_s12   ;;  %p492_p0 = scmp.ge.s32.totalorder %s605_s12, 1  ;;  %s605_s12 = sphi %s627_s12, %s14_s12  }
   0x2   : > { %p141_p1 = scmp.lt.s32.totalorder %s605_s12, 3 }
   0x4   : > { %p142_p2 = pnand %p492_p0, %p141_p1 }
   0x5   : > { %v591_v0 = vld [vmem:[%s672_s1] sm:$0xff] (!%p142_p2)   ;;  %s493_s16 = sshll.u32 (!%p142_p2), %s633_s13, 3  ;;  %v592_v1 = vld [vmem:[%s672_s1 + $0x8] sm:$0xff] (!%p142_p2)   ;;  %v593_v2 = vld [vmem:[%s672_s1 + $0x10] sm:$0xff] (!%p142_p2)   ;;  %vm246_vm0 = vcmask (!%p142_p2), 523264   ;;  %p181_p4 = scmp.lt.s32.totalorder (!%p142_p2), %s633_s13, 1 }
   0x6   : > { %145 = sbr.rel (%p142_p2) target bundleno = 267 (0x10b), region = 28  ;;  %p170_p3 = scmp.lt.s32.totalorder (!%p142_p2), %s493_s16, 15  ;;  %559 = vmatprep.subr.bf16.mxu0 (!%p142_p2), %v591_v0  ;;  %575 = vmatprep.subr.bf16.mxu1 (!%p142_p2), %v591_v0  ;;  %v594_v4 = vld [vmem:[%s672_s1 + $0x18] sm:$0xff] (!%p142_p2)   ;;  %vm398_vm1 = vcmask (!%p142_p2), 1040384  }
   0x7   : > { %560 = vmatpush3.bf16.msra.mxu0 (!%p142_p2), %v591_v0  ;;  %579 = vmatpush3.bf16.msra.mxu1 (!%p142_p2), %v591_v0 }
   0x8   : > { %561 = vmatprep.subr.bf16.mxu0 (!%p142_p2), %v592_v1  ;;  %576 = vmatprep.subr.bf16.mxu1 (!%p142_p2), %v592_v1 }
   0xb   : > { %562 = vmatpush3.bf16.msra.mxu0 (!%p142_p2), %v592_v1  ;;  %580 = vmatpush3.bf16.msra.mxu1 (!%p142_p2), %v592_v1 }
   0xc   : > { %563 = vmatprep.subr.bf16.mxu0 (!%p142_p2), %v593_v2  ;;  %577 = vmatprep.subr.bf16.mxu1 (!%p142_p2), %v593_v2 }
   0xd   : > { %s676_s16 = smov (!%p170_p3, %s493_s16), 15  ;;  %s678_s13 = smov (!%p181_p4, %s633_s13), 1 }
   0xe   : > { %s494_s21 = sshll.u32 %s676_s16, 2  ;;  %s497_s30 = sshll.u32 %s678_s13, 1 }
   0xf   : > { %s173_s24 = scalar_lea.vmem %s671_s0, %s494_s21  ;;  %564 = vmatpush3.bf16.msra.mxu0 %v593_v2  ;;  %581 = vmatpush3.bf16.msra.mxu1 %v593_v2  ;;  %s179_s29 = scalar_lea.vmem %s673_s2, %s494_s21 }
  0x10   : > { %v595_v3 = vld [vmem:[%s173_s24] sm:$0xff]   ;;  %v597_v5 = vld [vmem:[%s173_s24 + $0x10] sm:$0xff]   ;;  %565 = vmatprep.subr.bf16.mxu0 %v594_v4  ;;  %578 = vmatprep.subr.bf16.mxu1 %v594_v4  ;;  %v596_v6 = vld [vmem:[%s173_s24 + $0x8] sm:$0xff]   ;;  %s184_s6 = scalar_lea.vmem %s674_s3, %s497_s30 }
  0x11   : > { %567 = vmatprep.mubr.msk.bf16.mxu0 %vm246_vm0, %v595_v3  ;;  %571 = vmatprep.mubr.msk.bf16.mxu1 %vm246_vm0, %v597_v5  ;;  %v598_v7 = vld [vmem:[%s173_s24 + $0x18] sm:$0xff]  }
  0x13   : > { %566 = vmatpush3.bf16.msra.mxu0 %v594_v4  ;;  %582 = vmatpush3.bf16.msra.mxu1 %v594_v4 }
  0x16   : > { %568 = vmatmul.mubr.msk.bf16.vlgmr.msra.gmra.mrb[0].mxu0 %vm246_vm0, %v596_v6  ;;  %572 = vmatmul.mubr.msk.bf16.vlgmr.msra.gmra.mrb[0].mxu1 %vm246_vm0, %v598_v7 }
  0xe9   : > { %v569_v8 = vpop.f32.mrb[0].mxu0  ;;  %v573_v9 = vpop.f32.mrb[0].mxu1 }
  0xea   : > { %v293_v10 = vpop.f32.mrb[1].mxu0  ;;  %v309_v11 = vpop.f32.mrb[1].mxu1  ;;  %v379_v23 = vmul.f32 %v569_v8, %v569_v8  ;;  %v383_v35 = vmul.f32 %v573_v9, %v573_v9 }
  0xeb   : > { %v570_v12 = vpop.f32.mrb[2].mxu0  ;;  %v574_v13 = vpop.f32.mrb[2].mxu1  ;;  %v377_v14 = vmul.f32 %v293_v10, %v293_v10  ;;  %v381_v29 = vmul.f32 %v309_v11, %v309_v11 }
  0xec   : > { %v536_v15 = vpack.c.bf16 %v570_v12, %v569_v8  ;;  %v296_v16 = vpop.f32.mrb[3].mxu0  ;;  %v546_v17 = vpack.c.bf16 %v574_v13, %v573_v9  ;;  %v312_v18 = vpop.f32.mrb[3].mxu1  ;;  %v380_v26 = vmul.f32 %v570_v12, %v570_v12  ;;  %v384_v38 = vmul.f32 %v574_v13, %v574_v13 }
  0xed   : > { %v531_v19 = vpack.c.bf16 %v296_v16, %v293_v10  ;;  %v364_v20 = vadd.f32 %v296_v16, %v293_v10  ;;  %v378_v21 = vmul.f32 %v296_v16, %v296_v16  ;;  %v541_v22 = vpack.c.bf16 %v312_v18, %v309_v11 }
  0xee   : > { %548 = vst [vmem:[%s179_s29 + $0x8] sm:$0xff] %v536_v15   ;;  %550 = vst [vmem:[%s179_s29 + $0x18] sm:$0xff] %v546_v17   ;;  %v382_v34 = vmul.f32 %v312_v18, %v312_v18 }
  0xef   : > { %532 = vst [vmem:[%s179_s29] sm:$0xff] %v531_v19   ;;  %v365_v24 = vadd.f32 %v569_v8, %v364_v20  ;;  %v385_v25 = vadd.f32 %v378_v21, %v377_v14  ;;  %549 = vst [vmem:[%s179_s29 + $0x10] sm:$0xff] %v541_v22  }
  0xf1   : > { %v386_v27 = vadd.f32 %v385_v25, %v379_v23  ;;  %v366_v28 = vadd.f32 %v570_v12, %v365_v24 }
  0xf3   : > { %v367_v30 = vadd.f32 %v366_v28, %v309_v11  ;;  %v387_v31 = vadd.f32 %v386_v27, %v380_v26 }
  0xf5   : > { %v388_v32 = vadd.f32 %v387_v31, %v381_v29  ;;  %v368_v33 = vadd.f32 %v367_v30, %v312_v18 }
  0xf7   : > { %v369_v36 = vadd.f32 %v573_v9, %v368_v33  ;;  %v389_v37 = vadd.f32 %v388_v32, %v382_v34 }
  0xf9   : > { %v370_v39 = vadd.f32 %v574_v13, %v369_v36  ;;  %v390_v40 = vadd.f32 %v389_v37, %v383_v35 }
  0xfb   : > { %v371_v41 = vrot.slane %v370_v39, 4  ;;  %v391_v42 = vadd.f32 %v390_v40, %v384_v38 }
  0xfd   : > { %v372_v43 = vadd.f32 %v371_v41, %v370_v39  ;;  %v392_v44 = vrot.slane %v391_v42, 4 }
  0xff   : > { %v373_v45 = vrot.slane %v372_v43, 2  ;;  %v393_v46 = vadd.f32 %v392_v44, %v391_v42 }
 0x101   : > { %v374_v47 = vadd.f32 %v373_v45, %v372_v43  ;;  %v394_v48 = vrot.slane %v393_v46, 2 }
 0x103   : > { %v375_v49 = vrot.slane %v374_v47, 1  ;;  %v395_v50 = vadd.f32 %v394_v48, %v393_v46 }
 0x105   : > { %v396_v51 = vrot.slane %v395_v50, 1  ;;  %v376_v52 = vadd.f32 %v375_v49, %v374_v47 }
 0x107   : > { %v397_v53 = vadd.f32 %v396_v51, %v395_v50 }
 0x109   : > { %v399_v54 = vsel %vm398_vm1, %v376_v52, %v397_v53 }
 0x10a   : > { %400 = vst [vmem:[%s184_s6] sm:$0x3] %v399_v54 }
 0x10b PF: > { %s14_s12 = sadd.s32 1, %s605_s12  }
 0x10c   : > { %p11_p5 = scmp.ge.s32.totalorder %s14_s12, 4  }
 0x10e   :  { %13 = sbr.rel (!%p11_p5) target bundleno = 1 (0x1), region = 70 }

// kernel: forward.6
= control target key start
LH: loop header
LB: loop body
LE: loop exit
PB: predicated region body
PF: predicated region fallthrough
CT: control target
= control target key end

     0   :  { %s510_s1 = inlined_call_operand.vmem [shape: bf16[256,128], index: 1, kind: input, shape index: {}]   ;;  %s511_s0 = inlined_call_operand.vmem [shape: bf16[32,256], index: 0, kind: input, shape index: {}]   ;;  %s512_s2 = inlined_call_operand.vmem [shape: f32[1,128], index: 2, kind: input, shape index: {}]   ;;  %s513_s3 = inlined_call_operand.vmem [shape: f32[1,128], index: 3, kind: input, shape index: {}]   ;;  %s514_s4 = inlined_call_operand.vmem [shape: bf16[32,128], index: 4, kind: output, shape index: {}]  }
   0x1   :  { %v389_v0 = vld [vmem:[%s510_s1 + $0x40] sm:$0xff]   ;;  %v391_v2 = vld [vmem:[%s510_s1 + $0x48] sm:$0xff]   ;;  %v393_v4 = vld [vmem:[%s510_s1 + $0x50] sm:$0xff]  }
   0x2   :  { %v390_v1 = vld [vmem:[%s510_s1] sm:$0xff]   ;;  %345 = vmatprep.subr.bf16.mxu0 %v389_v0  ;;  %373 = vmatprep.subr.bf16.mxu1 %v389_v0  ;;  %v392_v3 = vld [vmem:[%s510_s1 + $0x8] sm:$0xff]   ;;  %v394_v5 = vld [vmem:[%s510_s1 + $0x10] sm:$0xff]   ;;  %v254_v0 = vlaneseq }
   0x3   :  { %346 = vmatpush3.bf16.msra.mxu0 %v390_v1  ;;  %381 = vmatpush3.bf16.msra.mxu1 %v390_v1  ;;  %v395_v6 = vld [vmem:[%s510_s1 + $0x58] sm:$0xff]   ;;  %v397_v8 = vld [vmem:[%s510_s1 + $0x60] sm:$0xff]   ;;  %v399_v10 = vld [vmem:[%s510_s1 + $0x68] sm:$0xff]  }
   0x4   :  { %347 = vmatprep.subr.bf16.mxu0 %v391_v2  ;;  %374 = vmatprep.subr.bf16.mxu1 %v391_v2  ;;  %v396_v7 = vld [vmem:[%s510_s1 + $0x18] sm:$0xff]   ;;  %v398_v9 = vld [vmem:[%s510_s1 + $0x20] sm:$0xff]   ;;  %v400_v13 = vld [vmem:[%s510_s1 + $0x28] sm:$0xff]   ;;  %v255_v1 = vshrl.u32 %v254_v0, 7 }
   0x5   :  { %v407_v11 = vld [vmem:[%s511_s0 + $0x4] ss:$8 sps:$4 sm:$0xff]   ;;  %v410_v12 = vld [vmem:[%s511_s0 + $0x14] ss:$8 sps:$4 sm:$0xff]   ;;  %v405_v18 = vld [vmem:[%s511_s0] ss:$8 sps:$4 sm:$0xff]  }
   0x6   :  { %v401_v14 = vld [vmem:[%s510_s1 + $0x70] sm:$0xff]   ;;  %202 = vmatprep.mubr.bf16.mxu0 %v407_v11  ;;  %210 = vmatprep.mubr.bf16.mxu1 %v410_v12  ;;  %v403_v16 = vld [vmem:[%s510_s1 + $0x78] sm:$0xff]   ;;  %v252_v2 = vld [vmem:[%s512_s2] sm:$0x1] }
   0x7   :  { %348 = vmatpush3.bf16.msra.mxu0 %v392_v3  ;;  %382 = vmatpush3.bf16.msra.mxu1 %v392_v3  ;;  %v402_v15 = vld [vmem:[%s510_s1 + $0x30] sm:$0xff]   ;;  %v404_v17 = vld [vmem:[%s510_s1 + $0x38] sm:$0xff]   ;;  %v256_v3 = vsub.s32 0, %v255_v1 }
   0x8   :  { %349 = vmatprep.subr.bf16.mxu0 %v393_v4  ;;  %375 = vmatprep.subr.bf16.mxu1 %v393_v4  ;;  %v408_v19 = vld [vmem:[%s511_s0 + $0x10] ss:$8 sps:$4 sm:$0xff]  }
   0xb   :  { %350 = vmatpush3.bf16.msra.mxu0 %v394_v5  ;;  %383 = vmatpush3.bf16.msra.mxu1 %v394_v5 }
   0xc   :  { %351 = vmatprep.subr.bf16.mxu0 %v395_v6  ;;  %376 = vmatprep.subr.bf16.mxu1 %v395_v6 }
   0xf   :  { %352 = vmatpush3.bf16.msra.mxu0 %v396_v7  ;;  %384 = vmatpush3.bf16.msra.mxu1 %v396_v7  ;;  %v325_v7 = vld [vmem:[%s513_s3] ss:$0 sm:$0xff] }
  0x10   :  { %353 = vmatprep.subr.bf16.mxu0 %v397_v8  ;;  %377 = vmatprep.subr.bf16.mxu1 %v397_v8 }
  0x13   :  { %354 = vmatpush3.bf16.msra.mxu0 %v398_v9  ;;  %385 = vmatpush3.bf16.msra.mxu1 %v398_v9 }
  0x14   :  { %355 = vmatprep.subr.bf16.mxu0 %v399_v10  ;;  %378 = vmatprep.subr.bf16.mxu1 %v399_v10 }
  0x17   :  { %356 = vmatpush3.bf16.msra.mxu0 %v400_v13  ;;  %386 = vmatpush3.bf16.msra.mxu1 %v400_v13 }
  0x18   :  { %357 = vmatprep.subr.bf16.mxu0 %v401_v14  ;;  %379 = vmatprep.subr.bf16.mxu1 %v401_v14 }
  0x1b   :  { %358 = vmatpush3.bf16.msra.mxu0 %v402_v15  ;;  %387 = vmatpush3.bf16.msra.mxu1 %v402_v15 }
  0x1c   :  { %359 = vmatprep.subr.bf16.mxu0 %v403_v16  ;;  %380 = vmatprep.subr.bf16.mxu1 %v403_v16 }
  0x1f   :  { %360 = vmatpush3.bf16.msra.mxu0 %v404_v17  ;;  %388 = vmatpush3.bf16.msra.mxu1 %v404_v17 }
  0x22   :  { %203 = vmatmul.mubr.bf16.vlgmr.msra.gmra.mrb[0].mxu0 %v405_v18  ;;  %211 = vmatmul.mubr.bf16.vlgmr.msra.gmra.mrb[0].mxu1 %v408_v19 }
  0xf5   :  { %v361_v20 = vpop.f32.mrb[0].mxu0  ;;  %v367_v21 = vpop.f32.mrb[0].mxu1 }
  0xf6   :  { %v362_v22 = vpop.f32.mrb[1].mxu0  ;;  %v368_v23 = vpop.f32.mrb[1].mxu1 }
  0xf7   :  { %v363_v24 = vadd.f32 %v362_v22, %v361_v20  ;;  %v364_v25 = vpop.f32.mrb[2].mxu0  ;;  %v369_v26 = vadd.f32 %v368_v23, %v367_v21  ;;  %v370_v27 = vpop.f32.mrb[2].mxu1 }
  0xf8   :  { %v365_v28 = vpop.f32.mrb[3].mxu0  ;;  %v371_v29 = vpop.f32.mrb[3].mxu1 }
  0xf9   :  { %v366_v30 = vadd.f32 %v365_v28, %v364_v25  ;;  %v372_v31 = vadd.f32 %v371_v29, %v370_v27  ;;  %v229_v32 = vmul.f32 %v363_v24, %v363_v24  ;;  %v231_v33 = vmul.f32 %v369_v26, %v369_v26 }
  0xfb   :  { %v219_v34 = vadd.f32 %v366_v30, %v363_v24  ;;  %v230_v35 = vmul.f32 %v366_v30, %v366_v30  ;;  %v232_v39 = vmul.f32 %v372_v31, %v372_v31 }
  0xfd   :  { %v233_v36 = vadd.f32 %v230_v35, %v229_v32  ;;  %v220_v37 = vadd.f32 %v369_v26, %v219_v34 }
  0xff   :  { %v221_v38 = vadd.f32 %v372_v31, %v220_v37  ;;  %v234_v40 = vadd.f32 %v233_v36, %v231_v33 }
 0x101   :  { %v222_v41 = vrot.slane %v221_v38, 4  ;;  %v235_v42 = vadd.f32 %v234_v40, %v232_v39 }
 0x103   :  { %v223_v43 = vadd.f32 %v222_v41, %v221_v38  ;;  %v236_v44 = vrot.slane %v235_v42, 4 }
 0x105   :  { %v224_v45 = vrot.slane %v223_v43, 2  ;;  %v237_v46 = vadd.f32 %v236_v44, %v235_v42 }
 0x107   :  { %v225_v47 = vadd.f32 %v224_v45, %v223_v43  ;;  %v238_v48 = vrot.slane %v237_v46, 2 }
 0x109   :  { %v226_v49 = vrot.slane %v225_v47, 1  ;;  %v239_v50 = vadd.f32 %v238_v48, %v237_v46 }
 0x10b   :  { %v227_v51 = vadd.f32 %v226_v49, %v225_v47  ;;  %v240_v52 = vrot.slane %v239_v50, 1 }
 0x10d   :  { %v228_v53 = vmul.f32 0.03125, %v227_v51  ;;  %v241_v54 = vadd.f32 %v240_v52, %v239_v50 }
 0x10f   :  { %v242_v55 = vmul.f32 0.03125, %v241_v54  ;;  %v243_v56 = vmul.f32 %v228_v53, %v228_v53  ;;  %v248_v57 = vsub.f32 %v363_v24, %v228_v53  ;;  %v249_v58 = vsub.f32 %v366_v30, %v228_v53 }
 0x110   :  { %v250_v59 = vsub.f32 %v369_v26, %v228_v53  ;;  %v251_v60 = vsub.f32 %v372_v31, %v228_v53 }
 0x111   :  { %v244_v61 = vsub.f32 %v242_v55, %v243_v56 }
 0x113   :  { %v245_v62 = vmax.f32 %v244_v61, 0.0 }
 0x115   :  { %v246_v63 = vadd.f32 1e-05, %v245_v62 }
 0x117   :  { %411 = vrsqrt.f32 %v246_v63 }
 0x121   :  { %v412_v4 = vpop.eup %411 }
 0x122   :  { %v253_v5 = vmul.f32 %v412_v4, %v252_v2 }
 0x124   :  { %v257_v6 = vrot.slane %v253_v5, %v256_v3 }
 0x126   :  { %v258_v8 = vmul.f32 %v257_v6, %v248_v57  ;;  %v259_v9 = vmul.f32 %v257_v6, %v249_v58  ;;  %v260_v10 = vmul.f32 %v257_v6, %v250_v59  ;;  %v261_v11 = vmul.f32 %v257_v6, %v251_v60 }
 0x128   :  { %v269_v12 = vadd.f32 %v325_v7, %v258_v8  ;;  %v270_v13 = vadd.f32 %v325_v7, %v259_v9  ;;  %v271_v14 = vadd.f32 %v325_v7, %v260_v10  ;;  %v272_v15 = vadd.f32 %v325_v7, %v261_v11 }
 0x12a   :  { %v273_v16 = vmul.f32 0.2, %v269_v12  ;;  %v274_v17 = vmul.f32 0.2, %v270_v13  ;;  %v275_v18 = vmul.f32 0.2, %v271_v14 }
 0x12b   :  { %v276_v19 = vmul.f32 0.2, %v272_v15 }
 0x12c   :  { %v277_v20 = vmax.f32 %v269_v12, %v273_v16  ;;  %v278_v21 = vmax.f32 %v270_v13, %v274_v17  ;;  %v279_v22 = vmax.f32 %v271_v14, %v275_v18 }
 0x12d   :  { %v280_v23 = vmax.f32 %v272_v15, %v276_v19 }
 0x12e   :  { %v337_v24 = vpack.c.bf16 %v278_v21, %v277_v20 }
 0x12f   :  { %v342_v25 = vpack.c.bf16 %v280_v23, %v279_v22 }
 0x130   :  { %338 = vst [vmem:[%s514_s4] sm:$0xff] %v337_v24  }
 0x131   :  { %344 = vst [vmem:[%s514_s4 + $0x8] sm:$0xff] %v342_v25  }

// kernel: forward.7
= control target key start
LH: loop header
LB: loop body
LE: loop exit
PB: predicated region body
PF: predicated region fallthrough
CT: control target
= control target key end

     0   :  { %s625_s1 = inlined_call_operand.vmem [shape: bf16[512,128], index: 1, kind: input, shape index: {}]   ;;  %s626_s0 = inlined_call_operand.vmem [shape: bf16[8,512], index: 0, kind: input, shape index: {}]   ;;  %s627_s2 = inlined_call_operand.vmem [shape: f32[1,128], index: 2, kind: input, shape index: {}]   ;;  %s628_s3 = inlined_call_operand.vmem [shape: bf16[8,128], index: 3, kind: output, shape index: {}]  }
   0x1   :  { %v461_v0 = vld [vmem:[%s625_s1 + $0x40] sm:$0xff]   ;;  %v465_v4 = vld [vmem:[%s625_s1 + $0x48] sm:$0xff]   ;;  %v469_v8 = vld [vmem:[%s625_s1 + $0x50] sm:$0xff]  }
   0x2   :  { %v462_v1 = vld [vmem:[%s625_s1 + $0xc0] sm:$0xff]   ;;  %417 = vmatprep.subr.bf16.mxu0 %v461_v0  ;;  %v466_v5 = vld [vmem:[%s625_s1 + $0xc8] sm:$0xff]   ;;  %v470_v9 = vld [vmem:[%s625_s1 + $0xd0] sm:$0xff]  }
   0x3   :  { %v463_v2 = vld [vmem:[%s625_s1] sm:$0xff]   ;;  %439 = vmatprep.subr.bf16.mxu1 %v462_v1  ;;  %v467_v6 = vld [vmem:[%s625_s1 + $0x8] sm:$0xff]   ;;  %v471_v10 = vld [vmem:[%s625_s1 + $0x10] sm:$0xff]  }
   0x4   :  { %v464_v3 = vld [vmem:[%s625_s1 + $0x80] sm:$0xff]   ;;  %418 = vmatpush3.bf16.msra.mxu0 %v463_v2  ;;  %v468_v7 = vld [vmem:[%s625_s1 + $0x88] sm:$0xff]   ;;  %v472_v11 = vld [vmem:[%s625_s1 + $0x90] sm:$0xff]  }
   0x5   :  { %440 = vmatpush3.bf16.msra.mxu1 %v464_v3  ;;  %419 = vmatprep.subr.bf16.mxu0 %v465_v4  ;;  %v473_v12 = vld [vmem:[%s625_s1 + $0x58] sm:$0xff]   ;;  %v477_v16 = vld [vmem:[%s625_s1 + $0x60] sm:$0xff]   ;;  %v481_v20 = vld [vmem:[%s625_s1 + $0x68] sm:$0xff]  }
   0x6   :  { %441 = vmatprep.subr.bf16.mxu1 %v466_v5  ;;  %v474_v13 = vld [vmem:[%s625_s1 + $0xd8] sm:$0xff]   ;;  %v478_v17 = vld [vmem:[%s625_s1 + $0xe0] sm:$0xff]   ;;  %v482_v21 = vld [vmem:[%s625_s1 + $0xe8] sm:$0xff]  }
   0x7   :  { %v475_v14 = vld [vmem:[%s625_s1 + $0x18] sm:$0xff]   ;;  %v479_v18 = vld [vmem:[%s625_s1 + $0x20] sm:$0xff]   ;;  %v483_v22 = vld [vmem:[%s625_s1 + $0x28] sm:$0xff]  }
   0x8   :  { %420 = vmatpush3.bf16.msra.mxu0 %v467_v6  ;;  %v476_v15 = vld [vmem:[%s625_s1 + $0x98] sm:$0xff]   ;;  %v480_v19 = vld [vmem:[%s625_s1 + $0xa0] sm:$0xff]   ;;  %v484_v23 = vld [vmem:[%s625_s1 + $0xa8] sm:$0xff]  }
   0x9   :  { %442 = vmatpush3.bf16.msra.mxu1 %v468_v7  ;;  %421 = vmatprep.subr.bf16.mxu0 %v469_v8  ;;  %v485_v24 = vld [vmem:[%s625_s1 + $0x70] sm:$0xff]   ;;  %v489_v28 = vld [vmem:[%s625_s1 + $0x78] sm:$0xff]   ;;  %v15_v32 = vld [vmem:[%s626_s0] sm:$0xff] }
   0xa   :  { %443 = vmatprep.subr.bf16.mxu1 %v470_v9  ;;  %v486_v25 = vld [vmem:[%s625_s1 + $0xf0] sm:$0xff]   ;;  %v490_v29 = vld [vmem:[%s625_s1 + $0xf8] sm:$0xff]   ;;  %v16_v33 = vld [vmem:[%s626_s0 + $0x8] sm:$0xff]  ;;  %v381_v34 = vcombine.low %v15_v32, %v15_v32  ;;  %v382_v35 = vcombine.high %v15_v32, %v15_v32 }
   0xb   :  { %v487_v26 = vld [vmem:[%s625_s1 + $0x30] sm:$0xff]   ;;  %v491_v30 = vld [vmem:[%s625_s1 + $0x38] sm:$0xff]   ;;  %v383_v36 = vcombine.low %v16_v33, %v16_v33  ;;  %v384_v37 = vcombine.high %v16_v33, %v16_v33  ;;  %v380_v40 = vld [vmem:[%s627_s2] ss:$0 sm:$0xff] }
   0xc   :  { %422 = vmatpush3.bf16.msra.mxu0 %v471_v10  ;;  %v488_v27 = vld [vmem:[%s625_s1 + $0xb0] sm:$0xff]   ;;  %v492_v31 = vld [vmem:[%s625_s1 + $0xb8] sm:$0xff]   ;;  %326 = vmatprep.mubr.bf16.mxu0 %v382_v35 }
   0xd   :  { %444 = vmatpush3.bf16.msra.mxu1 %v472_v11  ;;  %423 = vmatprep.subr.bf16.mxu0 %v473_v12 }
   0xe   :  { %445 = vmatprep.subr.bf16.mxu1 %v474_v13  ;;  %366 = vmatprep.mubr.bf16.mxu1 %v384_v37 }
  0x10   :  { %424 = vmatpush3.bf16.msra.mxu0 %v475_v14 }
  0x11   :  { %446 = vmatpush3.bf16.msra.mxu1 %v476_v15  ;;  %425 = vmatprep.subr.bf16.mxu0 %v477_v16 }
  0x12   :  { %447 = vmatprep.subr.bf16.mxu1 %v478_v17 }
  0x14   :  { %426 = vmatpush3.bf16.msra.mxu0 %v479_v18 }
  0x15   :  { %448 = vmatpush3.bf16.msra.mxu1 %v480_v19  ;;  %427 = vmatprep.subr.bf16.mxu0 %v481_v20 }
  0x16   :  { %449 = vmatprep.subr.bf16.mxu1 %v482_v21 }
  0x18   :  { %428 = vmatpush3.bf16.msra.mxu0 %v483_v22 }
  0x19   :  { %450 = vmatpush3.bf16.msra.mxu1 %v484_v23  ;;  %429 = vmatprep.subr.bf16.mxu0 %v485_v24 }
  0x1a   :  { %451 = vmatprep.subr.bf16.mxu1 %v486_v25 }
  0x1c   :  { %430 = vmatpush3.bf16.msra.mxu0 %v487_v26 }
  0x1d   :  { %452 = vmatpush3.bf16.msra.mxu1 %v488_v27  ;;  %431 = vmatprep.subr.bf16.mxu0 %v489_v28 }
  0x1e   :  { %453 = vmatprep.subr.bf16.mxu1 %v490_v29 }
  0x20   :  { %432 = vmatpush3.bf16.msra.mxu0 %v491_v30 }
  0x21   :  { %454 = vmatpush3.bf16.msra.mxu1 %v492_v31 }
  0x23   :  { %327 = vmatmul.mubr.bf16.vlgmr.msra.gmra.mrb[0].mxu0 %v381_v34 }
  0x24   :  { %367 = vmatmul.mubr.bf16.vlgmr.msra.gmra.mrb[0].mxu1 %v383_v36 }
  0xf6   :  { %v433_v38 = vpop.f32.mrb[0].mxu0 }
  0xf7   :  { %v455_v39 = vpop.f32.mrb[0].mxu1  ;;  %v434_v41 = vpop.f32.mrb[1].mxu0 }
  0xf8   :  { %v456_v42 = vpop.f32.mrb[1].mxu1  ;;  %v435_v43 = vadd.f32 %v434_v41, %v433_v38  ;;  %v436_v45 = vpop.f32.mrb[2].mxu0 }
  0xf9   :  { %v457_v44 = vadd.f32 %v456_v42, %v455_v39  ;;  %v458_v46 = vpop.f32.mrb[2].mxu1  ;;  %v437_v47 = vpop.f32.mrb[3].mxu0 }
  0xfa   :  { %v459_v48 = vpop.f32.mrb[3].mxu1  ;;  %v329_v49 = vadd.f32 %v435_v43, %v380_v40 }
  0xfc   :  { %v369_v50 = vadd.f32 %v457_v44, %v329_v49 }
  0xfe   :  { %v374_v51 = vpack.c.bf16 %v369_v50, %v369_v50 }
 0x100   :  { %375 = vst [vmem:[%s628_s3] sm:$0xf] %v374_v51 }

</bundles_post_ra>
